<compile_context>
chip_gen: v6e
topology: v6e:2x2x1
jax: 0.10.0
libtpu: 0.0.40
codegen_flags: <defaults>
</compile_context>

<pallas_src>
import jax
import jax.numpy as jnp
from jax.experimental import pallas as pl
from jax.experimental.pallas import tpu as pltpu

LANE = 128


def _round_up(v, m):
    return (v + m - 1) // m * m


def _pick_row_tile(np_):
    for t in (512, 256, 128):
        if np_ % t == 0:
            return t
    return np_  # unreachable: np_ is always a multiple of 128


# ---------------------------------------------------------------------------
# Fused kernel.
#   grid = (n_layers + 1, n_row_tiles)
#     layer axis: 0 = encoder copy phase, 1..L = GIN layers ("arbitrary": state carried in VMEM)
#     tile  axis: node-row tiles of size TM
# ---------------------------------------------------------------------------
def _gin_layers_kernel(
    h0_ref,   # [TM, Hp] bf16  encoder-output row block (only consumed in the copy phase)
    a_ref,    # [TM, Np] bf16  adjacency row block, A' = A + I  (A'[dst, src])
    w1_ref,   # [1, Hp, Hp] bf16  per-layer W1 with BatchNorm folded in
    b1_ref,   # [1, 1,  Hp] f32   per-layer b1 with BatchNorm folded in
    w2_ref,   # [1, Hp, Hp] bf16  per-layer W2
    b2_ref,   # [1, 1,  Hp] f32   per-layer b2
    o_ref,    # [TM, Hp] f32   output row block
    ha_ref,   # [Np, Hp] bf16  node-state ping-pong buffer 0
    hb_ref,   # [Np, Hp] bf16  node-state ping-pong buffer 1
):
    l = pl.program_id(0)              # 0 = copy phase, 1..L = GIN layers
    i = pl.program_id(1)              # node-row tile
    last = pl.num_programs(0) - 1
    tm = o_ref.shape[0]
    row0 = pl.multiple_of(i * tm, tm)
    parity = l % 2                    # read buffer for real layers; write buffer = 1 - parity

    # ---- copy phase (grid layer 0): stream encoder output into buffer 1 ----
    @pl.when(l == 0)
    def _():
        hb_ref[pl.ds(row0, tm), :] = h0_ref[...]

        # degenerate n_layers == 0: output is just the encoder output
        @pl.when(l == last)
        def _():
            o_ref[...] = h0_ref[...].astype(o_ref.dtype)

    # ---- GIN layer (l - 1) ----
    @pl.when(l > 0)
    def _():
        def layer(read_ref, write_ref):
            x = read_ref[...]                                           # [Np, Hp] bf16, all nodes
            # aggregation (self term folded into A'):  h = A' @ x, f32 accumulation
            h = jnp.dot(a_ref[...], x, preferred_element_type=jnp.float32)
            # MLP: Linear(+BN folded) -> ReLU -> Linear, then outer ReLU (dropout = identity)
            z = jnp.dot(h.astype(jnp.bfloat16), w1_ref[0],
                        preferred_element_type=jnp.float32) + b1_ref[0]
            z = jnp.maximum(z, 0.0)
            z = jnp.dot(z.astype(jnp.bfloat16), w2_ref[0],
                        preferred_element_type=jnp.float32) + b2_ref[0]
            z = jnp.maximum(z, 0.0)
            write_ref[pl.ds(row0, tm), :] = z.astype(jnp.bfloat16)

            @pl.when(l == last)                 # single HBM writeback of the result
            def _():
                o_ref[...] = z.astype(o_ref.dtype)

        @pl.when(parity == 1)
        def _():
            layer(hb_ref, ha_ref)               # read buf1 (written by l-1), write buf0

        @pl.when(parity == 0)
        def _():
            layer(ha_ref, hb_ref)               # read buf0, write buf1


# ---------------------------------------------------------------------------
# Wrapper: encoder in XLA, fold BN, pad to lane multiples, cast to bf16, one pallas_call.
# ---------------------------------------------------------------------------
@jax.jit
def gin_forward(x, adj, enc_params, layer_params):
    n, _ = x.shape
    w_enc, b_enc = enc_params
    hidden = w_enc.shape[1]
    n_layers = len(layer_params)

    # node_encoder2 is a tiny [N,X]@[X,H] matmul -> plain XLA, so no encoder operand occupies
    # VMEM for the whole multi-layer kernel.
    h0 = x @ w_enc + b_enc                                            # [N, H] f32

    if n_layers == 0:
        return h0

    np_ = _round_up(max(n, 1), LANE)      # node axis (also adjacency lane axis)
    hp = _round_up(hidden, LANE)
    tm = _pick_row_tile(np_)
    n_tiles = np_ // tm

    # lane-dense zero padding; bf16 matmul operands (f32 accumulation inside the kernel)
    h0_p = jnp.zeros((np_, hp), jnp.bfloat16).at[:n, :hidden].set(h0.astype(jnp.bfloat16))
    # GIN self term folded in: A' = A + (1 + eps) * I  with eps = 0; small integer entries
    # (edge multiplicities) are exact in bf16.
    adj_p = jnp.zeros((np_, np_), jnp.bfloat16).at[:n, :n].set(
        (adj + jnp.eye(n, dtype=adj.dtype)).astype(jnp.bfloat16))

    # Fold BatchNorm (eval mode) into the first Linear, pad, cast, stack over layers.
    w1s, b1s, w2s, b2s = [], [], [], []
    for (w1, b1, gamma, beta, rmean, rvar, w2, b2) in layer_params:
        scale = gamma * jax.lax.rsqrt(rvar + 1e-5)                    # [1, H]
        w1f = w1 * scale                                              # W1' = W1 * scale
        b1f = (b1 - rmean) * scale + beta                             # b1' = (b1-rmean)*scale+beta
        w1s.append(jnp.zeros((hp, hp), jnp.bfloat16)
                   .at[:hidden, :hidden].set(w1f.astype(jnp.bfloat16)))
        b1s.append(jnp.zeros((1, hp), jnp.float32).at[:, :hidden].set(b1f))
        w2s.append(jnp.zeros((hp, hp), jnp.bfloat16)
                   .at[:hidden, :hidden].set(w2.astype(jnp.bfloat16)))
        b2s.append(jnp.zeros((1, hp), jnp.float32).at[:, :hidden].set(b2))
    w1s = jnp.stack(w1s)   # [L, Hp, Hp] bf16
    b1s = jnp.stack(b1s)   # [L, 1,  Hp] f32
    w2s = jnp.stack(w2s)   # [L, Hp, Hp] bf16
    b2s = jnp.stack(b2s)   # [L, 1,  Hp] f32

    # Explicit VMEM budget (v5e's default scoped limit is only 16 MiB). Double-buffered inputs
    # + output + the two bf16 ping-pong state buffers, with 2x headroom, clamped to a range
    # that is safe on v5e/v6e (128 MiB physical) and v7x (64 MiB physical).
    vmem_needed = (
        2 * tm * hp * 2          # h0 row blocks (bf16)
        + 2 * tm * np_ * 2       # adjacency row blocks (bf16)
        + 2 * 2 * hp * hp * 2    # W1 + W2 (bf16)
        + 2 * 2 * 8 * hp * 4     # b1 + b2 (f32, sublane padded)
        + 2 * tm * hp * 4        # output row blocks (f32)
        + 2 * np_ * hp * 2       # ping-pong node-state scratch (bf16)
    )
    vmem_limit = int(min(max(2 * vmem_needed, 32 << 20), 56 << 20))

    out = pl.pallas_call(
        _gin_layers_kernel,
        grid=(n_layers + 1, n_tiles),
        in_specs=[
            # encoder output: streamed per tile during the copy phase only; pinned to block 0
            # afterwards so it is not re-fetched (and not resident) for the real layers.
            pl.BlockSpec((tm, hp), lambda l, i: (i * (l == 0), 0)),
            # adjacency: streamed in (TM, Np) row blocks -> VMEM O(TM*N), not O(N^2);
            # pinned to block 0 during the copy phase (it is unused there).
            pl.BlockSpec((tm, np_), lambda l, i: (i * (l > 0), 0)),
            # per-layer weights/biases: layer index l-1, clamped to 0 during the copy phase
            # (acts as a prefetch of layer 0's weights).
            pl.BlockSpec((1, hp, hp), lambda l, i: ((l - 1) * (l > 0), 0, 0)),
            pl.BlockSpec((1, 1, hp), lambda l, i: ((l - 1) * (l > 0), 0, 0)),
            pl.BlockSpec((1, hp, hp), lambda l, i: ((l - 1) * (l > 0), 0, 0)),
            pl.BlockSpec((1, 1, hp), lambda l, i: ((l - 1) * (l > 0), 0, 0)),
        ],
        out_specs=pl.BlockSpec((tm, hp), lambda l, i: (i, 0)),
        out_shape=jax.ShapeDtypeStruct((np_, hp), jnp.float32),
        scratch_shapes=[
            pltpu.VMEM((np_, hp), jnp.bfloat16),   # node-state buffer 0
            pltpu.VMEM((np_, hp), jnp.bfloat16),   # node-state buffer 1
        ],
        compiler_params=pltpu.CompilerParams(
            # Layer axis must stay "arbitrary": the node state is carried in VMEM scratch.
            # TODO(synk): the node-tile axis could be "parallel" on v7x (2 TCs) only if the
            #             layer-to-layer state were round-tripped via HBM / shared memory;
            #             with per-core VMEM scratch it must stay "arbitrary" for correctness.
            dimension_semantics=("arbitrary", "arbitrary"),
            vmem_limit_bytes=vmem_limit,
        ),
    )(h0_p, adj_p, w1s, b1s, w2s, b2s)

    return out[:n, :hidden]


# ---------------------------------------------------------------------------
# Pure-JAX f32 reference (un-fused, BN explicit) for a correctness spot-check.
# ---------------------------------------------------------------------------
def gin_forward_ref(x, adj, enc_params, layer_params):
    w_enc, b_enc = enc_params
    h = x @ w_enc + b_enc
    for (w1, b1, gamma, beta, rmean, rvar, w2, b2) in layer_params:
        agg = adj @ h
        z = (h + agg) @ w1 + b1
        z = (z - rmean) * jax.lax.rsqrt(rvar + 1e-5) * gamma + beta
        z = jnp.maximum(z, 0.0)
        z = z @ w2 + b2
        h = jnp.maximum(z, 0.0)
    return h


# ---------------------------------------------------------------------------
def init_params(key, x_dim, hidden, n_layers):
    keys = jax.random.split(key, 3 + 6 * n_layers)
    ki = iter(keys)

    def lin(k, din, dout):
        bound = 1.0 / jnp.sqrt(din)
        kw, kb = jax.random.split(k)
        w = jax.random.uniform(kw, (din, dout), jnp.float32, -bound, bound)
        b = jax.random.uniform(kb, (1, dout), jnp.float32, -bound, bound)
        return w, b

    w_enc, b_enc = lin(next(ki), x_dim, hidden)

    layers = []
    for _ in range(n_layers):
        w1, b1 = lin(next(ki), hidden, hidden)
        w2, b2 = lin(next(ki), hidden, hidden)
        gamma = 1.0 + 0.1 * jax.random.normal(next(ki), (1, hidden), jnp.float32)
        beta = 0.1 * jax.random.normal(next(ki), (1, hidden), jnp.float32)
        rmean = 0.05 * jax.random.normal(next(ki), (1, hidden), jnp.float32)
        rvar = 1.0 + 0.1 * jax.random.uniform(next(ki), (1, hidden), jnp.float32)
        layers.append((w1, b1, gamma, beta, rmean, rvar, w2, b2))
    return (w_enc, b_enc), layers


# ---------------------------------------------------------------------------
if __name__ == "__main__":
    key = jax.random.PRNGKey(0)
    k_x, k_e, k_p = jax.random.split(key, 3)

    # Small synthetic graph
    N = 16          # number of nodes
    X_DIM = 8       # raw node feature dim
    HIDDEN = 32     # hidden_size
    N_LAYERS = 2    # n_layers
    E = 48          # number of directed edges

    x = jax.random.normal(k_x, (N, X_DIM), jnp.float32)
    edge_index = jax.random.randint(k_e, (2, E), 0, N)   # [2, E]: row0=src, row1=dst

    # dense adjacency: A[dst, src] = edge multiplicity (glue, outside the kernel)
    adj = jnp.zeros((N, N), jnp.float32).at[edge_index[1], edge_index[0]].add(1.0)

    enc_params, layer_params = init_params(k_p, X_DIM, HIDDEN, N_LAYERS)

    out = gin_forward(x, adj, enc_params, layer_params)
    out = jax.block_until_ready(out)

    ref = gin_forward_ref(x, adj, enc_params, layer_params)
    assert out.shape == (N, HIDDEN)
    max_err = float(jnp.max(jnp.abs(out - ref)))
    # bf16 matmul operands with f32 accumulation -> loosened tolerance vs the pure-f32 reference
    assert jnp.allclose(out, ref, atol=5e-2, rtol=5e-2), f"mismatch vs reference (max |err|={max_err})"

    print("KERNEL_OK")
</pallas_src>

<mosaic_0001>
module attributes {stable_mosaic.version = 11 : i64} {
  func.func @_gin_layers_kernel(%arg0: i32, %arg1: i32, %arg2: memref<128x128xbf16, #tpu.memory_space<vmem>>, %arg3: memref<128x128xbf16, #tpu.memory_space<vmem>>, %arg4: memref<1x128x128xbf16, #tpu.memory_space<vmem>>, %arg5: memref<1x1x128xf32, #tpu.memory_space<vmem>>, %arg6: memref<1x128x128xbf16, #tpu.memory_space<vmem>>, %arg7: memref<1x1x128xf32, #tpu.memory_space<vmem>>, %arg8: memref<128x128xf32, #tpu.memory_space<vmem>>, %arg9: memref<128x128xbf16, #tpu.memory_space<vmem>>, %arg10: memref<128x128xbf16, #tpu.memory_space<vmem>>) attributes {dimension_semantics = [#tpu.dimension_semantics<arbitrary>, #tpu.dimension_semantics<arbitrary>], iteration_bounds = array<i64: 3, 1>, scalar_prefetch = 0 : i64, scratch_operands = 2 : i64, tpu.core_type = #tpu.core_type<tc>, window_params = [{transform_indices = @transform_0, window_bounds = array<i64: 128, 128>}, {transform_indices = @transform_1, window_bounds = array<i64: 128, 128>}, {transform_indices = @transform_2, window_bounds = array<i64: 1, 128, 128>}, {transform_indices = @transform_3, window_bounds = array<i64: 1, 1, 128>}, {transform_indices = @transform_4, window_bounds = array<i64: 1, 128, 128>}, {transform_indices = @transform_5, window_bounds = array<i64: 1, 1, 128>}, {transform_indices = @transform_6, window_bounds = array<i64: 128, 128>}]} {
    %c128_i32 = arith.constant 128 : i32
    %0 = arith.muli %arg1, %c128_i32 : i32
    %1 = tpu.assume_multiple %0, 128 : i32
    %c2_i32 = arith.constant 2 : i32
    %c0_i32 = arith.constant 0 : i32
    %2 = arith.cmpi eq, %c2_i32, %c0_i32 : i32
    %c1_i32 = arith.constant 1 : i32
    %3 = arith.select %2, %c1_i32, %c2_i32 : i32
    %4 = arith.remsi %arg0, %3 : i32
    %c0_i32_0 = arith.constant 0 : i32
    %5 = arith.cmpi ne, %4, %c0_i32_0 : i32
    %c0_i32_1 = arith.constant 0 : i32
    %6 = arith.cmpi slt, %4, %c0_i32_1 : i32
    %c0_i32_2 = arith.constant 0 : i32
    %7 = arith.cmpi slt, %3, %c0_i32_2 : i32
    %8 = arith.xori %6, %7 : i1
    %9 = arith.andi %8, %5 : i1
    %10 = arith.addi %4, %3 : i32
    %11 = arith.select %9, %10, %4 : i32
    %c0_i32_3 = arith.constant 0 : i32
    %12 = arith.cmpi eq, %arg0, %c0_i32_3 : i32
    %13 = arith.extui %12 : i1 to i32
    %c0_i32_4 = arith.constant 0 : i32
    %14 = arith.cmpi ne, %13, %c0_i32_4 : i32
    scf.if %14 {
      %c0 = arith.constant 0 : index
      %c0_7 = arith.constant 0 : index
      %18 = vector.load %arg2[%c0, %c0_7] : memref<128x128xbf16, #tpu.memory_space<vmem>>, vector<128x128xbf16>
      %19 = arith.index_cast %1 : i32 to index
      %c0_8 = arith.constant 0 : index
      %20 = vector.load %arg10[%19, %c0_8] : memref<128x128xbf16, #tpu.memory_space<vmem>>, vector<128x128xbf16>
      tpu.vector_store %arg10[%19, %c0_8], %18 {strides = array<i32>} : memref<128x128xbf16, #tpu.memory_space<vmem>>, vector<128x128xbf16>,
      %c2_i32_9 = arith.constant 2 : i32
      %21 = arith.cmpi eq, %arg0, %c2_i32_9 : i32
      %22 = arith.extui %21 : i1 to i32
      %c0_i32_10 = arith.constant 0 : i32
      %23 = arith.cmpi ne, %22, %c0_i32_10 : i32
      scf.if %23 {
        %c0_11 = arith.constant 0 : index
        %c0_12 = arith.constant 0 : index
        %24 = vector.load %arg2[%c0_11, %c0_12] : memref<128x128xbf16, #tpu.memory_space<vmem>>, vector<128x128xbf16>
        %25 = arith.extf %24 : vector<128x128xbf16> to vector<128x128xf32>
        %c0_13 = arith.constant 0 : index
        %c0_14 = arith.constant 0 : index
        %26 = vector.load %arg8[%c0_13, %c0_14] : memref<128x128xf32, #tpu.memory_space<vmem>>, vector<128x128xf32>
        tpu.vector_store %arg8[%c0_13, %c0_14], %25 {strides = array<i32>} : memref<128x128xf32, #tpu.memory_space<vmem>>, vector<128x128xf32>,
      } else {
      }
    } else {
    }
    %c0_i32_5 = arith.constant 0 : i32
    %15 = arith.cmpi sgt, %arg0, %c0_i32_5 : i32
    %16 = arith.extui %15 : i1 to i32
    %c0_i32_6 = arith.constant 0 : i32
    %17 = arith.cmpi ne, %16, %c0_i32_6 : i32
    scf.if %17 {
      %c1_i32_7 = arith.constant 1 : i32
      %18 = arith.cmpi eq, %11, %c1_i32_7 : i32
      %19 = arith.extui %18 : i1 to i32
      %c0_i32_8 = arith.constant 0 : i32
      %20 = arith.cmpi ne, %19, %c0_i32_8 : i32
      scf.if %20 {
        %c0 = arith.constant 0 : index
        %c0_11 = arith.constant 0 : index
        %24 = vector.load %arg10[%c0, %c0_11] : memref<128x128xbf16, #tpu.memory_space<vmem>>, vector<128x128xbf16>
        %c0_12 = arith.constant 0 : index
        %c0_13 = arith.constant 0 : index
        %25 = vector.load %arg3[%c0_12, %c0_13] : memref<128x128xbf16, #tpu.memory_space<vmem>>, vector<128x128xbf16>
        %cst = arith.constant dense<0.000000e+00> : vector<128x128xf32>
        %26 = tpu.matmul %25, %24, %cst {dimension_numbers = #tpu.dot_dimension_numbers<[1], [0], [0], [1], [0, 0, 1, 1], [], []>} : vector<128x128xbf16>, vector<128x128xbf16>, vector<128x128xf32> -> vector<128x128xf32>
        %27 = arith.truncf %26 : vector<128x128xf32> to vector<128x128xbf16>
        %c0_14 = arith.constant 0 : index
        %c0_15 = arith.constant 0 : index
        %c0_16 = arith.constant 0 : index
        %28 = vector.load %arg4[%c0_14, %c0_15, %c0_16] : memref<1x128x128xbf16, #tpu.memory_space<vmem>>, vector<1x128x128xbf16>
        %29 = vector.shape_cast %28 : vector<1x128x128xbf16> to vector<128x128xbf16>
        %cst_17 = arith.constant dense<0.000000e+00> : vector<128x128xf32>
        %30 = tpu.matmul %27, %29, %cst_17 {dimension_numbers = #tpu.dot_dimension_numbers<[1], [0], [0], [1], [0, 0, 1, 1], [], []>} : vector<128x128xbf16>, vector<128x128xbf16>, vector<128x128xf32> -> vector<128x128xf32>
        %c0_18 = arith.constant 0 : index
        %c0_19 = arith.constant 0 : index
        %c0_20 = arith.constant 0 : index
        %31 = vector.load %arg5[%c0_18, %c0_19, %c0_20] : memref<1x1x128xf32, #tpu.memory_space<vmem>>, vector<1x1x128xf32>
        %32 = vector.shape_cast %31 : vector<1x1x128xf32> to vector<1x128xf32>
        %33 = vector.broadcast %32 : vector<1x128xf32> to vector<128x128xf32>
        %34 = arith.addf %30, %33 : vector<128x128xf32>
        %cst_21 = arith.constant 0.000000e+00 : f32
        %35 = vector.broadcast %cst_21 : f32 to vector<128x128xf32>
        %36 = arith.maximumf %34, %35 : vector<128x128xf32>
        %37 = arith.truncf %36 : vector<128x128xf32> to vector<128x128xbf16>
        %c0_22 = arith.constant 0 : index
        %c0_23 = arith.constant 0 : index
        %c0_24 = arith.constant 0 : index
        %38 = vector.load %arg6[%c0_22, %c0_23, %c0_24] : memref<1x128x128xbf16, #tpu.memory_space<vmem>>, vector<1x128x128xbf16>
        %39 = vector.shape_cast %38 : vector<1x128x128xbf16> to vector<128x128xbf16>
        %cst_25 = arith.constant dense<0.000000e+00> : vector<128x128xf32>
        %40 = tpu.matmul %37, %39, %cst_25 {dimension_numbers = #tpu.dot_dimension_numbers<[1], [0], [0], [1], [0, 0, 1, 1], [], []>} : vector<128x128xbf16>, vector<128x128xbf16>, vector<128x128xf32> -> vector<128x128xf32>
        %c0_26 = arith.constant 0 : index
        %c0_27 = arith.constant 0 : index
        %c0_28 = arith.constant 0 : index
        %41 = vector.load %arg7[%c0_26, %c0_27, %c0_28] : memref<1x1x128xf32, #tpu.memory_space<vmem>>, vector<1x1x128xf32>
        %42 = vector.shape_cast %41 : vector<1x1x128xf32> to vector<1x128xf32>
        %43 = vector.broadcast %42 : vector<1x128xf32> to vector<128x128xf32>
        %44 = arith.addf %40, %43 : vector<128x128xf32>
        %cst_29 = arith.constant 0.000000e+00 : f32
        %45 = vector.broadcast %cst_29 : f32 to vector<128x128xf32>
        %46 = arith.maximumf %44, %45 : vector<128x128xf32>
        %47 = arith.truncf %46 : vector<128x128xf32> to vector<128x128xbf16>
        %48 = arith.index_cast %1 : i32 to index
        %c0_30 = arith.constant 0 : index
        %49 = vector.load %arg9[%48, %c0_30] : memref<128x128xbf16, #tpu.memory_space<vmem>>, vector<128x128xbf16>
        tpu.vector_store %arg9[%48, %c0_30], %47 {strides = array<i32>} : memref<128x128xbf16, #tpu.memory_space<vmem>>, vector<128x128xbf16>,
        %c2_i32_31 = arith.constant 2 : i32
        %50 = arith.cmpi eq, %arg0, %c2_i32_31 : i32
        %51 = arith.extui %50 : i1 to i32
        %c0_i32_32 = arith.constant 0 : i32
        %52 = arith.cmpi ne, %51, %c0_i32_32 : i32
        scf.if %52 {
          %c0_33 = arith.constant 0 : index
          %c0_34 = arith.constant 0 : index
          %53 = vector.load %arg8[%c0_33, %c0_34] : memref<128x128xf32, #tpu.memory_space<vmem>>, vector<128x128xf32>
          tpu.vector_store %arg8[%c0_33, %c0_34], %46 {strides = array<i32>} : memref<128x128xf32, #tpu.memory_space<vmem>>, vector<128x128xf32>,
        } else {
        }
      } else {
      }
      %c0_i32_9 = arith.constant 0 : i32
      %21 = arith.cmpi eq, %11, %c0_i32_9 : i32
      %22 = arith.extui %21 : i1 to i32
      %c0_i32_10 = arith.constant 0 : i32
      %23 = arith.cmpi ne, %22, %c0_i32_10 : i32
      scf.if %23 {
        %c0 = arith.constant 0 : index
        %c0_11 = arith.constant 0 : index
        %24 = vector.load %arg9[%c0, %c0_11] : memref<128x128xbf16, #tpu.memory_space<vmem>>, vector<128x128xbf16>
        %c0_12 = arith.constant 0 : index
        %c0_13 = arith.constant 0 : index
        %25 = vector.load %arg3[%c0_12, %c0_13] : memref<128x128xbf16, #tpu.memory_space<vmem>>, vector<128x128xbf16>
        %cst = arith.constant dense<0.000000e+00> : vector<128x128xf32>
        %26 = tpu.matmul %25, %24, %cst {dimension_numbers = #tpu.dot_dimension_numbers<[1], [0], [0], [1], [0, 0, 1, 1], [], []>} : vector<128x128xbf16>, vector<128x128xbf16>, vector<128x128xf32> -> vector<128x128xf32>
        %27 = arith.truncf %26 : vector<128x128xf32> to vector<128x128xbf16>
        %c0_14 = arith.constant 0 : index
        %c0_15 = arith.constant 0 : index
        %c0_16 = arith.constant 0 : index
        %28 = vector.load %arg4[%c0_14, %c0_15, %c0_16] : memref<1x128x128xbf16, #tpu.memory_space<vmem>>, vector<1x128x128xbf16>
        %29 = vector.shape_cast %28 : vector<1x128x128xbf16> to vector<128x128xbf16>
        %cst_17 = arith.constant dense<0.000000e+00> : vector<128x128xf32>
        %30 = tpu.matmul %27, %29, %cst_17 {dimension_numbers = #tpu.dot_dimension_numbers<[1], [0], [0], [1], [0, 0, 1, 1], [], []>} : vector<128x128xbf16>, vector<128x128xbf16>, vector<128x128xf32> -> vector<128x128xf32>
        %c0_18 = arith.constant 0 : index
        %c0_19 = arith.constant 0 : index
        %c0_20 = arith.constant 0 : index
        %31 = vector.load %arg5[%c0_18, %c0_19, %c0_20] : memref<1x1x128xf32, #tpu.memory_space<vmem>>, vector<1x1x128xf32>
        %32 = vector.shape_cast %31 : vector<1x1x128xf32> to vector<1x128xf32>
        %33 = vector.broadcast %32 : vector<1x128xf32> to vector<128x128xf32>
        %34 = arith.addf %30, %33 : vector<128x128xf32>
        %cst_21 = arith.constant 0.000000e+00 : f32
        %35 = vector.broadcast %cst_21 : f32 to vector<128x128xf32>
        %36 = arith.maximumf %34, %35 : vector<128x128xf32>
        %37 = arith.truncf %36 : vector<128x128xf32> to vector<128x128xbf16>
        %c0_22 = arith.constant 0 : index
        %c0_23 = arith.constant 0 : index
        %c0_24 = arith.constant 0 : index
        %38 = vector.load %arg6[%c0_22, %c0_23, %c0_24] : memref<1x128x128xbf16, #tpu.memory_space<vmem>>, vector<1x128x128xbf16>
        %39 = vector.shape_cast %38 : vector<1x128x128xbf16> to vector<128x128xbf16>
        %cst_25 = arith.constant dense<0.000000e+00> : vector<128x128xf32>
        %40 = tpu.matmul %37, %39, %cst_25 {dimension_numbers = #tpu.dot_dimension_numbers<[1], [0], [0], [1], [0, 0, 1, 1], [], []>} : vector<128x128xbf16>, vector<128x128xbf16>, vector<128x128xf32> -> vector<128x128xf32>
        %c0_26 = arith.constant 0 : index
        %c0_27 = arith.constant 0 : index
        %c0_28 = arith.constant 0 : index
        %41 = vector.load %arg7[%c0_26, %c0_27, %c0_28] : memref<1x1x128xf32, #tpu.memory_space<vmem>>, vector<1x1x128xf32>
        %42 = vector.shape_cast %41 : vector<1x1x128xf32> to vector<1x128xf32>
        %43 = vector.broadcast %42 : vector<1x128xf32> to vector<128x128xf32>
        %44 = arith.addf %40, %43 : vector<128x128xf32>
        %cst_29 = arith.constant 0.000000e+00 : f32
        %45 = vector.broadcast %cst_29 : f32 to vector<128x128xf32>
        %46 = arith.maximumf %44, %45 : vector<128x128xf32>
        %47 = arith.truncf %46 : vector<128x128xf32> to vector<128x128xbf16>
        %48 = arith.index_cast %1 : i32 to index
        %c0_30 = arith.constant 0 : index
        %49 = vector.load %arg10[%48, %c0_30] : memref<128x128xbf16, #tpu.memory_space<vmem>>, vector<128x128xbf16>
        tpu.vector_store %arg10[%48, %c0_30], %47 {strides = array<i32>} : memref<128x128xbf16, #tpu.memory_space<vmem>>, vector<128x128xbf16>,
        %c2_i32_31 = arith.constant 2 : i32
        %50 = arith.cmpi eq, %arg0, %c2_i32_31 : i32
        %51 = arith.extui %50 : i1 to i32
        %c0_i32_32 = arith.constant 0 : i32
        %52 = arith.cmpi ne, %51, %c0_i32_32 : i32
        scf.if %52 {
          %c0_33 = arith.constant 0 : index
          %c0_34 = arith.constant 0 : index
          %53 = vector.load %arg8[%c0_33, %c0_34] : memref<128x128xf32, #tpu.memory_space<vmem>>, vector<128x128xf32>
          tpu.vector_store %arg8[%c0_33, %c0_34], %46 {strides = array<i32>} : memref<128x128xf32, #tpu.memory_space<vmem>>, vector<128x128xf32>,
        } else {
        }
      } else {
      }
    } else {
    }
    return
  }
  func.func @transform_0(%arg0: i32, %arg1: i32) -> (i32, i32) {
    %c0_i32 = arith.constant 0 : i32
    %0 = arith.cmpi eq, %arg0, %c0_i32 : i32
    %1 = arith.extui %0 : i1 to i32
    %2 = arith.muli %arg1, %1 : i32
    %c0_i32_0 = arith.constant 0 : i32
    %c0_i32_1 = arith.constant 0 : i32
    return %2, %c0_i32_0 : i32, i32
  }
  func.func @transform_1(%arg0: i32, %arg1: i32) -> (i32, i32) {
    %c0_i32 = arith.constant 0 : i32
    %0 = arith.cmpi sgt, %arg0, %c0_i32 : i32
    %1 = arith.extui %0 : i1 to i32
    %2 = arith.muli %arg1, %1 : i32
    %c0_i32_0 = arith.constant 0 : i32
    %c0_i32_1 = arith.constant 0 : i32
    return %2, %c0_i32_0 : i32, i32
  }
  func.func @transform_2(%arg0: i32, %arg1: i32) -> (i32, i32, i32) {
    %c1_i32 = arith.constant 1 : i32
    %0 = arith.subi %arg0, %c1_i32 : i32
    %c0_i32 = arith.constant 0 : i32
    %1 = arith.cmpi sgt, %arg0, %c0_i32 : i32
    %2 = arith.extui %1 : i1 to i32
    %3 = arith.muli %0, %2 : i32
    %c0_i32_0 = arith.constant 0 : i32
    %c0_i32_1 = arith.constant 0 : i32
    %c0_i32_2 = arith.constant 0 : i32
    return %3, %c0_i32_0, %c0_i32_1 : i32, i32, i32
  }
  func.func @transform_3(%arg0: i32, %arg1: i32) -> (i32, i32, i32) {
    %c1_i32 = arith.constant 1 : i32
    %0 = arith.subi %arg0, %c1_i32 : i32
    %c0_i32 = arith.constant 0 : i32
    %1 = arith.cmpi sgt, %arg0, %c0_i32 : i32
    %2 = arith.extui %1 : i1 to i32
    %3 = arith.muli %0, %2 : i32
    %c0_i32_0 = arith.constant 0 : i32
    %c0_i32_1 = arith.constant 0 : i32
    %c0_i32_2 = arith.constant 0 : i32
    return %3, %c0_i32_0, %c0_i32_1 : i32, i32, i32
  }
  func.func @transform_4(%arg0: i32, %arg1: i32) -> (i32, i32, i32) {
    %c1_i32 = arith.constant 1 : i32
    %0 = arith.subi %arg0, %c1_i32 : i32
    %c0_i32 = arith.constant 0 : i32
    %1 = arith.cmpi sgt, %arg0, %c0_i32 : i32
    %2 = arith.extui %1 : i1 to i32
    %3 = arith.muli %0, %2 : i32
    %c0_i32_0 = arith.constant 0 : i32
    %c0_i32_1 = arith.constant 0 : i32
    %c0_i32_2 = arith.constant 0 : i32
    return %3, %c0_i32_0, %c0_i32_1 : i32, i32, i32
  }
  func.func @transform_5(%arg0: i32, %arg1: i32) -> (i32, i32, i32) {
    %c1_i32 = arith.constant 1 : i32
    %0 = arith.subi %arg0, %c1_i32 : i32
    %c0_i32 = arith.constant 0 : i32
    %1 = arith.cmpi sgt, %arg0, %c0_i32 : i32
    %2 = arith.extui %1 : i1 to i32
    %3 = arith.muli %0, %2 : i32
    %c0_i32_0 = arith.constant 0 : i32
    %c0_i32_1 = arith.constant 0 : i32
    %c0_i32_2 = arith.constant 0 : i32
    return %3, %c0_i32_0, %c0_i32_1 : i32, i32, i32
  }
  func.func @transform_6(%arg0: i32, %arg1: i32) -> (i32, i32) {
    %c0_i32 = arith.constant 0 : i32
    %c0_i32_0 = arith.constant 0 : i32
    return %arg1, %c0_i32 : i32, i32
  }
}

</mosaic_0001>

<bundles_post_ra>
// kernel: gin_forward.1
= control target key start
LH: loop header
LB: loop body
LE: loop exit
PB: predicated region body
PF: predicated region fallthrough
CT: control target
= control target key end

     0   :  { %s2947_s21 = smov 0   ;;  %s2949_s22 = smov 0   ;;  %s3298_s0 = inlined_call_operand.vmem [shape: bf16[128,128], index: 0, kind: input, shape index: {}]   ;;  %s3299_s1 = inlined_call_operand.vmem [shape: bf16[128,128], index: 1, kind: input, shape index: {}]   ;;  %s3300_s2 = inlined_call_operand.vmem [shape: bf16[2,128,128], index: 2, kind: input, shape index: {}]   ;;  %s3301_s3 = inlined_call_operand.vmem [shape: f32[2,1,128], index: 3, kind: input, shape index: {}]   ;;  %s3302_s4 = inlined_call_operand.vmem [shape: bf16[2,128,128], index: 4, kind: input, shape index: {}]   ;;  %s3303_s5 = inlined_call_operand.vmem [shape: f32[2,1,128], index: 5, kind: input, shape index: {}]   ;;  %s3304_s6 = inlined_call_operand.vmem [shape: f32[128,128], index: 6, kind: output, shape index: {}]  }
   0x1   :  { %s2951_s23 = smov 0  }
   0x2 LB: > { %s28_s24 = sadd.s32 1, %s2906_s22  ;;  %p2190_p0 = scmp.ge.s32.totalorder %s2910_s23, 1  ;;  %s2910_s23 = sphi %s2951_s23, %s16_s23   ;;  %s2906_s22 = sphi %s2949_s22, %s3306_s22   ;;  %s2902_s21 = sphi %s2947_s21, %s3305_s21  }
   0x3   : > { %p30_p1 = scmp.ge.s32.totalorder %s28_s24, 3  ;;  %p360_p2 = scmp.lt.s32.totalorder %s2910_s23, 4 }
   0x5   : > { %s3308_s24 = smov (%p30_p1, %s28_s24), 0  ;;  %p361_p3 = pnand %p2190_p0, %p360_p2 }
   0x6   : > { %p458_p4 = scmp.gt.s32.totalorder (!%p361_p3), %s2902_s21, 0  ;;  %s2191_s25 = sadd.s32 (!%p361_p3), 4294967295, %s2902_s21 }
   0x7   : > { %364 = sbr.rel (%p361_p3) target bundleno = 1415 (0x587), region = 44  ;;  %s514_s26 = ssub.s32 (!%p361_p3), 0, %s2902_s21 }
   0x8   : > { %p513_p5 = scmp.lt.s32.totalorder (!%p361_p3), %s2902_s21, 0  ;;  %s2199_s28 = smin.u32 (!%p361_p3), %s2902_s21, %s514_s26 }
   0x9   : > { %s516_s30 = sand.u32 (!%p361_p3), 1, %s2199_s28   ;;  %p2202_p8 = scmp.ne.s32.totalorder (!%p361_p3), %s2902_s21, 0 }
   0xa   : > { %s517_s7 = ssub.s32 (!%p361_p3), 0, %s516_s30 }
   0xc   : > { %s459_s27 = scalar_select %p458_p4, 1, 0 }
   0xd   : > { %s3310_s7 = smov (!%p513_p5, %s517_s7), %s516_s30  ;;  %p2203_p9 = scmp.ne.s32.totalorder (!%p2202_p8), %s2902_s21, 2 }
   0xe   : > { %s460_s29 = smul.u32 %s2191_s25, %s459_s27  ;;  %p2201_p7 = scmp.lt.s32.totalorder %s3310_s7, 0 }
   0xf   : > { %s523_s8 = sadd.s32 2, %s3310_s7 }
  0x10   : > { %p461_p6 = scmp.lt.s32.totalorder %s460_s29, 1  ;;  %s3314_s8 = smov (!%p2201_p7, %s523_s8), %s3310_s7 }
  0x11   : > { %528 = sbr.rel (%p2202_p8) target bundleno = 38 (0x26), region = 48 }
  0x12   : > { %s3312_s29 = smov (!%p461_p6, %s460_s29), 1 }
  0x13   : > { %s2313_s9 = sshll.u32 %s3312_s29, 6  ;;  %s2975_s12 = scalar_lea.vmem %s3301_s3, %s3312_s29 }
  0x14   : > { %s2980_s15 = scalar_lea.vmem %s3300_s2, %s2313_s9  ;;  %s2985_s18 = scalar_lea.vmem %s3302_s4, %s2313_s9 }
  0x15   : > { %s2990_s25 = scalar_lea.vmem %s3303_s5, %s3312_s29 }
  0x16   : > { %v529_v0 = vld [vmem:[%s3298_s0] sm:$0xff]   ;;  %v531_v1 = vld [vmem:[%s3298_s0 + $0x8] sm:$0xff]   ;;  %v533_v2 = vld [vmem:[%s3298_s0 + $0x10] sm:$0xff]   ;;  %568 = sbr.rel (%p2203_p9) target bundleno = 38 (0x26), region = 52 }
  0x17   : > { %549 = vst [vmem:[#allocation3] sm:$0xff] %v529_v0   ;;  %551 = vst [vmem:[#allocation3 + $0x8] sm:$0xff] %v531_v1   ;;  %v535_v3 = vld [vmem:[%s3298_s0 + $0x18] sm:$0xff]   ;;  %v537_v4 = vld [vmem:[%s3298_s0 + $0x20] sm:$0xff]  }
  0x18   : > { %553 = vst [vmem:[#allocation3 + $0x10] sm:$0xff] %v533_v2   ;;  %v539_v5 = vld [vmem:[%s3298_s0 + $0x28] sm:$0xff]   ;;  %555 = vst [vmem:[#allocation3 + $0x18] sm:$0xff] %v535_v3   ;;  %v541_v6 = vld [vmem:[%s3298_s0 + $0x30] sm:$0xff]  }
  0x19   : > { %557 = vst [vmem:[#allocation3 + $0x20] sm:$0xff] %v537_v4   ;;  %559 = vst [vmem:[#allocation3 + $0x28] sm:$0xff] %v539_v5   ;;  %v543_v7 = vld [vmem:[%s3298_s0 + $0x38] sm:$0xff]  }
  0x1a   : > { %561 = vst [vmem:[#allocation3 + $0x30] sm:$0xff] %v541_v6   ;;  %563 = vst [vmem:[#allocation3 + $0x38] sm:$0xff] %v543_v7  }
  0x1b   : > { %v2348_v8 = vld [vmem:[%s3298_s0] sm:$0xff]   ;;  %v2459_v9 = vld [vmem:[%s3298_s0 + $0x8] sm:$0xff]   ;;  %v2460_v10 = vld [vmem:[%s3298_s0 + $0x10] sm:$0xff]  }
  0x1c   : > { %v2349_v11 = vunpack.c.l.bf16 %v2348_v8  ;;  %v2350_v12 = vunpack.c.h.bf16 %v2348_v8  ;;  %v2353_v13 = vunpack.c.l.bf16 %v2459_v9  ;;  %v2354_v14 = vunpack.c.h.bf16 %v2459_v9  ;;  %v2461_v15 = vld [vmem:[%s3298_s0 + $0x18] sm:$0xff]   ;;  %v2462_v16 = vld [vmem:[%s3298_s0 + $0x20] sm:$0xff]   ;;  %v2463_v17 = vld [vmem:[%s3298_s0 + $0x28] sm:$0xff]  }
  0x1d   : > { %v2357_v18 = vunpack.c.l.bf16 %v2460_v10  ;;  %v2358_v19 = vunpack.c.h.bf16 %v2460_v10  ;;  %v2361_v20 = vunpack.c.l.bf16 %v2461_v15  ;;  %v2362_v21 = vunpack.c.h.bf16 %v2461_v15  ;;  %v2464_v22 = vld [vmem:[%s3298_s0 + $0x30] sm:$0xff]   ;;  %v2465_v23 = vld [vmem:[%s3298_s0 + $0x38] sm:$0xff]  }
  0x1e   : > { %601 = vst [vmem:[%s3304_s6] sm:$0xff] %v2349_v11  ;;  %602 = vst [vmem:[%s3304_s6 + $0x8] sm:$0xff] %v2350_v12  ;;  %v2365_v24 = vunpack.c.l.bf16 %v2462_v16  ;;  %v2366_v25 = vunpack.c.h.bf16 %v2462_v16  ;;  %v2369_v26 = vunpack.c.l.bf16 %v2463_v17  ;;  %v2370_v27 = vunpack.c.h.bf16 %v2463_v17 }
  0x1f   : > { %603 = vst [vmem:[%s3304_s6 + $0x10] sm:$0xff] %v2353_v13  ;;  %604 = vst [vmem:[%s3304_s6 + $0x18] sm:$0xff] %v2354_v14  ;;  %v2373_v28 = vunpack.c.l.bf16 %v2464_v22  ;;  %v2374_v29 = vunpack.c.h.bf16 %v2464_v22  ;;  %v2377_v30 = vunpack.c.l.bf16 %v2465_v23  ;;  %v2378_v31 = vunpack.c.h.bf16 %v2465_v23 }
  0x20   : > { %605 = vst [vmem:[%s3304_s6 + $0x20] sm:$0xff] %v2357_v18  ;;  %606 = vst [vmem:[%s3304_s6 + $0x28] sm:$0xff] %v2358_v19 }
  0x21   : > { %607 = vst [vmem:[%s3304_s6 + $0x30] sm:$0xff] %v2361_v20  ;;  %608 = vst [vmem:[%s3304_s6 + $0x38] sm:$0xff] %v2362_v21 }
  0x22   : > { %609 = vst [vmem:[%s3304_s6 + $0x40] sm:$0xff] %v2365_v24  ;;  %610 = vst [vmem:[%s3304_s6 + $0x48] sm:$0xff] %v2366_v25 }
  0x23   : > { %611 = vst [vmem:[%s3304_s6 + $0x50] sm:$0xff] %v2369_v26  ;;  %612 = vst [vmem:[%s3304_s6 + $0x58] sm:$0xff] %v2370_v27 }
  0x24   : > { %613 = vst [vmem:[%s3304_s6 + $0x60] sm:$0xff] %v2373_v28  ;;  %614 = vst [vmem:[%s3304_s6 + $0x68] sm:$0xff] %v2374_v29 }
  0x25   : > { %615 = vst [vmem:[%s3304_s6 + $0x70] sm:$0xff] %v2377_v30  ;;  %616 = vst [vmem:[%s3304_s6 + $0x78] sm:$0xff] %v2378_v31 }
  0x26 PF: > { %p2204_p10 = scmp.le.s32.totalorder %s2902_s21, 0 }
  0x27   : > { %p2205_p11 = scmp.ne.s32.totalorder (!%p2204_p10), %s3314_s8, 1 }
  0x28   : > { %620 = sbr.rel (%p2204_p10) target bundleno = 1415 (0x587), region = 56 }
  0x2d   : > { %624 = sbr.rel (%p2205_p11) target bundleno = 729 (0x2d9), region = 60  ;;  %p2256_p12 = scmp.ne.s32.totalorder (!%p2205_p11), %s2902_s21, 2 }
  0x32   : > { %v2824_v32 = vld [vmem:[#allocation3 + $0x38] sm:$0xff]   ;;  %v2825_v33 = vld [vmem:[#allocation3 + $0x30] sm:$0xff]   ;;  %v2826_v34 = vld [vmem:[#allocation3 + $0x28] sm:$0xff]  }
  0x33   : > { %2576 = vmatprep.subr.bf16.mxu0 %v2824_v32  ;;  %v2827_v35 = vld [vmem:[#allocation3 + $0x20] sm:$0xff]   ;;  %v2828_v37 = vld [vmem:[#allocation3 + $0x18] sm:$0xff]   ;;  %v2829_v38 = vld [vmem:[#allocation3 + $0x10] sm:$0xff]  }
  0x34   : > { %2577 = vmatpush3.bf16.msra.mxu0 %v2824_v32  ;;  %v2832_v36 = vld [vmem:[%s3299_s1] sm:$0xff]   ;;  %v2840_v39 = vld [vmem:[%s2980_s15 + $0x38] sm:$0xff]   ;;  %v2841_v40 = vld [vmem:[%s2980_s15 + $0x30] sm:$0xff]  }
  0x35   : > { %2578 = vmatprep.subr.bf16.mxu0 %v2825_v33  ;;  %2592 = vmatprep.mubr.bf16.mxu0 %v2832_v36  ;;  %v2830_v41 = vld [vmem:[#allocation3 + $0x8] sm:$0xff]   ;;  %v2831_v43 = vld [vmem:[#allocation3] sm:$0xff]   ;;  %v2844_v45 = vld [vmem:[%s2980_s15 + $0x18] sm:$0xff]  }
  0x36   : > { %2608 = vmatprep.subr.bf16.mxu1 %v2840_v39  ;;  %v2842_v42 = vld [vmem:[%s2980_s15 + $0x28] sm:$0xff]   ;;  %v2843_v44 = vld [vmem:[%s2980_s15 + $0x20] sm:$0xff]   ;;  %v2834_v47 = vld [vmem:[%s3299_s1 + $0x10] sm:$0xff]  }
  0x37   : > { %2609 = vmatpush3.bf16.msra.mxu1 %v2840_v39  ;;  %v2833_v46 = vld [vmem:[%s3299_s1 + $0x8] sm:$0xff]   ;;  %v2845_v48 = vld [vmem:[%s2980_s15 + $0x10] sm:$0xff]   ;;  %v2835_v49 = vld [vmem:[%s3299_s1 + $0x18] sm:$0xff]  }
  0x38   : > { %2579 = vmatpush3.bf16.msra.mxu0 %v2825_v33  ;;  %2610 = vmatprep.subr.bf16.mxu1 %v2841_v40  ;;  %v2836_v50 = vld [vmem:[%s3299_s1 + $0x20] sm:$0xff]   ;;  %v2837_v51 = vld [vmem:[%s3299_s1 + $0x28] sm:$0xff]   ;;  %v2838_v52 = vld [vmem:[%s3299_s1 + $0x30] sm:$0xff]  }
  0x39   : > { %2580 = vmatprep.subr.bf16.mxu0 %v2826_v34  ;;  %v2839_v53 = vld [vmem:[%s3299_s1 + $0x38] sm:$0xff]   ;;  %v2846_v54 = vld [vmem:[%s2980_s15 + $0x8] sm:$0xff]   ;;  %v2847_v55 = vld [vmem:[%s2980_s15] sm:$0xff]  }
  0x3a   : > { %v2848_v56 = vld [vmem:[%s2985_s18 + $0x38] sm:$0xff]   ;;  %v2849_v57 = vld [vmem:[%s2985_s18 + $0x30] sm:$0xff]   ;;  %v2850_v58 = vld [vmem:[%s2985_s18 + $0x28] sm:$0xff]  }
  0x3b   : > { %2611 = vmatpush3.bf16.msra.mxu1 %v2841_v40  ;;  %v2851_v59 = vld [vmem:[%s2985_s18 + $0x20] sm:$0xff]   ;;  %v2852_v60 = vld [vmem:[%s2985_s18 + $0x18] sm:$0xff]   ;;  %v2853_v21 = vld [vmem:[%s2985_s18 + $0x10] sm:$0xff]  }
  0x3c   : > { %2581 = vmatpush3.bf16.msra.mxu0 %v2826_v34  ;;  %2612 = vmatprep.subr.bf16.mxu1 %v2842_v42  ;;  %v2854_v22 = vld [vmem:[%s2985_s18 + $0x8] sm:$0xff]   ;;  %v2855_v23 = vld [vmem:[%s2985_s18] sm:$0xff]  }
  0x3d   : > { %2582 = vmatprep.subr.bf16.mxu0 %v2827_v35  ;;  %v2222_v26 = vld [vmem:[%s2975_s12] ss:$0 sm:$0xff] }
  0x3f   : > { %2613 = vmatpush3.bf16.msra.mxu1 %v2842_v42 }
  0x40   : > { %2583 = vmatpush3.bf16.msra.mxu0 %v2827_v35  ;;  %2614 = vmatprep.subr.bf16.mxu1 %v2843_v44 }
  0x41   : > { %2584 = vmatprep.subr.bf16.mxu0 %v2828_v37 }
  0x43   : > { %2615 = vmatpush3.bf16.msra.mxu1 %v2843_v44 }
  0x44   : > { %2585 = vmatpush3.bf16.msra.mxu0 %v2828_v37  ;;  %2616 = vmatprep.subr.bf16.mxu1 %v2844_v45 }
  0x45   : > { %2586 = vmatprep.subr.bf16.mxu0 %v2829_v38 }
  0x47   : > { %2617 = vmatpush3.bf16.msra.mxu1 %v2844_v45 }
  0x48   : > { %2587 = vmatpush3.bf16.msra.mxu0 %v2829_v38  ;;  %2618 = vmatprep.subr.bf16.mxu1 %v2845_v48 }
  0x49   : > { %2588 = vmatprep.subr.bf16.mxu0 %v2830_v41 }
  0x4b   : > { %2619 = vmatpush3.bf16.msra.mxu1 %v2845_v48 }
  0x4c   : > { %2589 = vmatpush3.bf16.msra.mxu0 %v2830_v41  ;;  %2620 = vmatprep.subr.bf16.mxu1 %v2846_v54 }
  0x4d   : > { %2590 = vmatprep.subr.bf16.mxu0 %v2831_v43 }
  0x4f   : > { %2621 = vmatpush3.bf16.msra.mxu1 %v2846_v54 }
  0x50   : > { %2591 = vmatpush3.bf16.msra.mxu0 %v2831_v43  ;;  %2622 = vmatprep.subr.bf16.mxu1 %v2847_v55 }
  0x51   : > { %2640 = vmatprep.subr.bf16.mxu0 %v2848_v56 }
  0x53   : > { %2593 = vmatmul.mubr.bf16.vlgmr.msra.gmra.mxu0 %v2833_v46  ;;  %2623 = vmatpush3.bf16.msra.mxu1 %v2847_v55 }
  0x54   : > { %2596 = vmatprep.mubr.bf16.mxu0 %v2834_v47  ;;  %2768 = vmatprep.subr.bf16.mxu1 %v2848_v56 }
  0x55   : > { %2641 = vmatpush3.bf16.msra.mxu0 %v2848_v56 }
  0x56   : > { %2642 = vmatprep.subr.bf16.mxu0 %v2849_v57 }
  0x59   : > { %2643 = vmatpush3.bf16.msra.mxu0 %v2849_v57 }
  0x5a   : > { %2644 = vmatprep.subr.bf16.mxu0 %v2850_v58 }
  0x5b   : > { %2597 = vmatmul.mubr.bf16.gmra.mxu0 %v2835_v49 }
  0x5c   : > { %2600 = vmatprep.mubr.bf16.mxu0 %v2836_v50 }
  0x5d   : > { %2645 = vmatpush3.bf16.msra.mxu0 %v2850_v58 }
  0x5e   : > { %2646 = vmatprep.subr.bf16.mxu0 %v2851_v59 }
  0x61   : > { %2647 = vmatpush3.bf16.msra.mxu0 %v2851_v59 }
  0x62   : > { %2648 = vmatprep.subr.bf16.mxu0 %v2852_v60 }
  0x63   : > { %2601 = vmatmul.mubr.bf16.gmra.mxu0 %v2837_v51 }
  0x64   : > { %2604 = vmatprep.mubr.bf16.mxu0 %v2838_v52 }
  0x65   : > { %2649 = vmatpush3.bf16.msra.mxu0 %v2852_v60 }
  0x66   : > { %2650 = vmatprep.subr.bf16.mxu0 %v2853_v21 }
  0x69   : > { %2651 = vmatpush3.bf16.msra.mxu0 %v2853_v21 }
  0x6a   : > { %2652 = vmatprep.subr.bf16.mxu0 %v2854_v22 }
  0x6b   : > { %2605 = vmatmul.mubr.bf16.gmra.mxu0 %v2839_v53 }
  0x6d   : > { %2653 = vmatpush3.bf16.msra.mxu0 %v2854_v22 }
  0x6e   : > { %2654 = vmatprep.subr.bf16.mxu0 %v2855_v23 }
  0x71   : > { %2655 = vmatpush3.bf16.msra.mxu0 %v2855_v23 }
 0x113   : > { %v2594_v61 = vpop.f32.mrf.mxu0 }
 0x115   : > { %v787_v62 = vpop.f32.mrf.mxu0 }
 0x117   : > { %v2595_v63 = vpop.f32.mrf.mxu0 }
 0x118   : > { %v851_v2 = vpack.c.bf16 %v2595_v63, %v2594_v61 }
 0x119   : > { %v790_v0 = vpop.f32.mrf.mxu0 }
 0x11a   : > { %v850_v1 = vpack.c.bf16 %v790_v0, %v787_v62 }
 0x11b   : > { %v2598_v3 = vpop.f32.mrf.mxu0 }
 0x11c   : > { %2624 = vmatprep.mubr.bf16.mxu1 %v850_v1 }
 0x11d   : > { %v803_v4 = vpop.f32.mrf.mxu0  ;;  %2625 = vmatmul.mubr.bf16.vlgmr.msra.gmra.mxu1 %v851_v2 }
 0x11e   : > { %2776 = vmatpush3.bf16.msra.mxu1 %v2848_v56 }
 0x11f   : > { %v2599_v5 = vpop.f32.mrf.mxu0  ;;  %2769 = vmatprep.subr.bf16.mxu1 %v2849_v57 }
 0x120   : > { %v853_v8 = vpack.c.bf16 %v2599_v5, %v2598_v3 }
 0x121   : > { %v806_v6 = vpop.f32.mrf.mxu0 }
 0x122   : > { %v852_v7 = vpack.c.bf16 %v806_v6, %v803_v4  ;;  %2777 = vmatpush3.bf16.msra.mxu1 %v2849_v57 }
 0x123   : > { %v2602_v9 = vpop.f32.mrf.mxu0  ;;  %2770 = vmatprep.subr.bf16.mxu1 %v2850_v58 }
 0x124   : > { %2628 = vmatprep.mubr.bf16.mxu1 %v852_v7 }
 0x125   : > { %v819_v10 = vpop.f32.mrf.mxu0  ;;  %2629 = vmatmul.mubr.bf16.gmra.mxu1 %v853_v8 }
 0x126   : > { %2778 = vmatpush3.bf16.msra.mxu1 %v2850_v58 }
 0x127   : > { %v2603_v11 = vpop.f32.mrf.mxu0  ;;  %2771 = vmatprep.subr.bf16.mxu1 %v2851_v59 }
 0x128   : > { %v855_v14 = vpack.c.bf16 %v2603_v11, %v2602_v9 }
 0x129   : > { %v822_v12 = vpop.f32.mrf.mxu0 }
 0x12a   : > { %v854_v13 = vpack.c.bf16 %v822_v12, %v819_v10  ;;  %2779 = vmatpush3.bf16.msra.mxu1 %v2851_v59 }
 0x12b   : > { %v2606_v15 = vpop.f32.mrf.mxu0  ;;  %2772 = vmatprep.subr.bf16.mxu1 %v2852_v60 }
 0x12c   : > { %2632 = vmatprep.mubr.bf16.mxu1 %v854_v13 }
 0x12d   : > { %v835_v16 = vpop.f32.mrf.mxu0  ;;  %2633 = vmatmul.mubr.bf16.gmra.mxu1 %v855_v14 }
 0x12e   : > { %2780 = vmatpush3.bf16.msra.mxu1 %v2852_v60 }
 0x12f   : > { %v2607_v17 = vpop.f32.mrf.mxu0  ;;  %2773 = vmatprep.subr.bf16.mxu1 %v2853_v21 }
 0x130   : > { %v857_v20 = vpack.c.bf16 %v2607_v17, %v2606_v15 }
 0x131   : > { %v838_v18 = vpop.f32.mrf.mxu0 }
 0x132   : > { %v856_v19 = vpack.c.bf16 %v838_v18, %v835_v16  ;;  %2781 = vmatpush3.bf16.msra.mxu1 %v2853_v21  ;;  %v2231_v18 = vld [vmem:[%s2990_s25] ss:$0 sm:$0xff] }
 0x133   : > { %2774 = vmatprep.subr.bf16.mxu1 %v2854_v22 }
 0x134   : > { %2636 = vmatprep.mubr.bf16.mxu1 %v856_v19 }
 0x135   : > { %2637 = vmatmul.mubr.bf16.gmra.mxu1 %v857_v20 }
 0x136   : > { %2782 = vmatpush3.bf16.msra.mxu1 %v2854_v22 }
 0x137   : > { %2775 = vmatprep.subr.bf16.mxu1 %v2855_v23 }
 0x13a   : > { %2783 = vmatpush3.bf16.msra.mxu1 %v2855_v23 }
 0x1dd   : > { %v2626_v24 = vpop.f32.mrf.mxu1 }
 0x1de   : > { %v972_v30 = vadd.f32 %v2626_v24, %v2222_v26 }
 0x1df   : > { %v963_v25 = vpop.f32.mrf.mxu1 }
 0x1e0   : > { %v964_v28 = vadd.f32 %v2222_v26, %v963_v25  ;;  %v1028_v37 = vmax.f32 %v972_v30, 0.0 }
 0x1e1   : > { %v2627_v27 = vpop.f32.mrf.mxu1 }
 0x1e2   : > { %v975_v29 = vadd.f32 %v2627_v27, %v2222_v26  ;;  %v1026_v35 = vmax.f32 %v964_v28, 0.0 }
 0x1e3   : > { %v966_v31 = vpop.f32.mrf.mxu1 }
 0x1e4   : > { %v967_v32 = vadd.f32 %v2222_v26, %v966_v31  ;;  %v1029_v33 = vmax.f32 %v975_v29, 0.0 }
 0x1e5   : > { %v2630_v34 = vpop.f32.mrf.mxu1 }
 0x1e6   : > { %v1027_v36 = vmax.f32 %v967_v32, 0.0  ;;  %v1043_v40 = vpack.c.bf16 %v1029_v33, %v1028_v37  ;;  %v988_v44 = vadd.f32 %v2630_v34, %v2222_v26 }
 0x1e7   : > { %v979_v38 = vpop.f32.mrf.mxu1 }
 0x1e8   : > { %v1042_v39 = vpack.c.bf16 %v1027_v36, %v1026_v35  ;;  %v980_v42 = vadd.f32 %v2222_v26, %v979_v38  ;;  %v1032_v51 = vmax.f32 %v988_v44, 0.0 }
 0x1e9   : > { %v2631_v41 = vpop.f32.mrf.mxu1 }
 0x1ea   : > { %v991_v43 = vadd.f32 %v2631_v41, %v2222_v26  ;;  %2656 = vmatprep.mubr.bf16.mxu0 %v1042_v39  ;;  %v1030_v49 = vmax.f32 %v980_v42, 0.0 }
 0x1eb   : > { %v982_v45 = vpop.f32.mrf.mxu1  ;;  %2657 = vmatmul.mubr.bf16.vlgmr.msra.gmra.mxu0 %v1043_v40 }
 0x1ec   : > { %v983_v46 = vadd.f32 %v2222_v26, %v982_v45  ;;  %v1033_v47 = vmax.f32 %v991_v43, 0.0 }
 0x1ed   : > { %v2634_v48 = vpop.f32.mrf.mxu1 }
 0x1ee   : > { %v1031_v50 = vmax.f32 %v983_v46, 0.0  ;;  %v1045_v54 = vpack.c.bf16 %v1033_v47, %v1032_v51  ;;  %v1004_v58 = vadd.f32 %v2634_v48, %v2222_v26 }
 0x1ef   : > { %v995_v52 = vpop.f32.mrf.mxu1 }
 0x1f0   : > { %v1044_v53 = vpack.c.bf16 %v1031_v50, %v1030_v49  ;;  %v996_v56 = vadd.f32 %v2222_v26, %v995_v52  ;;  %v1036_v1 = vmax.f32 %v1004_v58, 0.0 }
 0x1f1   : > { %v2635_v55 = vpop.f32.mrf.mxu1 }
 0x1f2   : > { %v1007_v57 = vadd.f32 %v2635_v55, %v2222_v26  ;;  %2660 = vmatprep.mubr.bf16.mxu0 %v1044_v53  ;;  %v1034_v63 = vmax.f32 %v996_v56, 0.0 }
 0x1f3   : > { %v998_v59 = vpop.f32.mrf.mxu1  ;;  %2661 = vmatmul.mubr.bf16.gmra.mxu0 %v1045_v54 }
 0x1f4   : > { %v999_v60 = vadd.f32 %v2222_v26, %v998_v59  ;;  %v1037_v61 = vmax.f32 %v1007_v57, 0.0 }
 0x1f5   : > { %v2638_v62 = vpop.f32.mrf.mxu1 }
 0x1f6   : > { %v1035_v0 = vmax.f32 %v999_v60, 0.0  ;;  %v1047_v4 = vpack.c.bf16 %v1037_v61, %v1036_v1  ;;  %v1020_v8 = vadd.f32 %v2638_v62, %v2222_v26 }
 0x1f7   : > { %v1011_v2 = vpop.f32.mrf.mxu1 }
 0x1f8   : > { %v1046_v3 = vpack.c.bf16 %v1035_v0, %v1034_v63  ;;  %v1012_v6 = vadd.f32 %v2222_v26, %v1011_v2  ;;  %v1040_v14 = vmax.f32 %v1020_v8, 0.0 }
 0x1f9   : > { %v2639_v5 = vpop.f32.mrf.mxu1 }
 0x1fa   : > { %v1023_v7 = vadd.f32 %v2639_v5, %v2222_v26  ;;  %2664 = vmatprep.mubr.bf16.mxu1 %v1046_v3  ;;  %v1038_v12 = vmax.f32 %v1012_v6, 0.0 }
 0x1fb   : > { %v1014_v9 = vpop.f32.mrf.mxu1  ;;  %2665 = vmatmul.mubr.bf16.vlgmr.msra.gmra.mxu1 %v1047_v4 }
 0x1fc   : > { %v1015_v10 = vadd.f32 %v2222_v26, %v1014_v9  ;;  %v1041_v11 = vmax.f32 %v1023_v7, 0.0 }
 0x1fe   : > { %v1039_v13 = vmax.f32 %v1015_v10, 0.0  ;;  %v1049_v16 = vpack.c.bf16 %v1041_v11, %v1040_v14 }
 0x200   : > { %v1048_v15 = vpack.c.bf16 %v1039_v13, %v1038_v12 }
 0x202   : > { %2668 = vmatprep.mubr.bf16.mxu1 %v1048_v15 }
 0x203   : > { %2669 = vmatmul.mubr.bf16.gmra.mxu1 %v1049_v16 }
 0x2ab   : > { %v2658_v17 = vpop.f32.mrf.mxu0 }
 0x2ac   : > { %v3136_v20 = vadd.f32 %v2658_v17, %v2231_v18 }
 0x2ad   : > { %v1155_v19 = vpop.f32.mrf.mxu0 }
 0x2ae   : > { %v1156_v22 = vadd.f32 %v2231_v18, %v1155_v19  ;;  %v1220_v25 = vmax.f32 %v3136_v20, 0.0 }
 0x2af   : > { %v2659_v21 = vpop.f32.mrf.mxu0 }
 0x2b0   : > { %v3138_v23 = vadd.f32 %v2659_v21, %v2231_v18  ;;  %v1218_v29 = vmax.f32 %v1156_v22, 0.0 }
 0x2b1   : > { %v1158_v24 = vpop.f32.mrf.mxu0 }
 0x2b2   : > { %v1221_v26 = vmax.f32 %v3138_v23, 0.0  ;;  %v1159_v27 = vadd.f32 %v2231_v18, %v1158_v24 }
 0x2b3   : > { %v2662_v28 = vpop.f32.mrf.mxu0 }
 0x2b4   : > { %v2387_v30 = vpack.c.bf16 %v1221_v26, %v1220_v25  ;;  %v1219_v31 = vmax.f32 %v1159_v27, 0.0  ;;  %v1180_v34 = vadd.f32 %v2662_v28, %v2231_v18 }
 0x2b5   : > { %v1171_v32 = vpop.f32.mrf.mxu0 }
 0x2b6   : > { %2466 = vst [vmem:[#allocation2 + $0x8] sm:$0xff] %v2387_v30   ;;  %v2382_v33 = vpack.c.bf16 %v1219_v31, %v1218_v29  ;;  %v1172_v36 = vadd.f32 %v2231_v18, %v1171_v32  ;;  %v1224_v39 = vmax.f32 %v1180_v34, 0.0 }
 0x2b7   : > { %v2663_v35 = vpop.f32.mrf.mxu0 }
 0x2b8   : > { %2383 = vst [vmem:[#allocation2] sm:$0xff] %v2382_v33   ;;  %v1183_v37 = vadd.f32 %v2663_v35, %v2231_v18  ;;  %v1222_v43 = vmax.f32 %v1172_v36, 0.0 }
 0x2b9   : > { %v1174_v38 = vpop.f32.mrf.mxu0 }
 0x2ba   : > { %v1225_v40 = vmax.f32 %v1183_v37, 0.0  ;;  %v1175_v41 = vadd.f32 %v2231_v18, %v1174_v38 }
 0x2bb   : > { %v2666_v42 = vpop.f32.mrf.mxu1 }
 0x2bc   : > { %v2397_v44 = vpack.c.bf16 %v1225_v40, %v1224_v39  ;;  %v1223_v45 = vmax.f32 %v1175_v41, 0.0  ;;  %v1196_v48 = vadd.f32 %v2666_v42, %v2231_v18 }
 0x2bd   : > { %v1187_v46 = vpop.f32.mrf.mxu1 }
 0x2be   : > { %2468 = vst [vmem:[#allocation2 + $0x18] sm:$0xff] %v2397_v44   ;;  %v2392_v47 = vpack.c.bf16 %v1223_v45, %v1222_v43  ;;  %v1188_v50 = vadd.f32 %v2231_v18, %v1187_v46  ;;  %v1228_v53 = vmax.f32 %v1196_v48, 0.0 }
 0x2bf   : > { %v2667_v49 = vpop.f32.mrf.mxu1 }
 0x2c0   : > { %2467 = vst [vmem:[#allocation2 + $0x10] sm:$0xff] %v2392_v47   ;;  %v1199_v51 = vadd.f32 %v2667_v49, %v2231_v18  ;;  %v1226_v57 = vmax.f32 %v1188_v50, 0.0 }
 0x2c1   : > { %v1190_v52 = vpop.f32.mrf.mxu1 }
 0x2c2   : > { %v1229_v54 = vmax.f32 %v1199_v51, 0.0  ;;  %v1191_v55 = vadd.f32 %v2231_v18, %v1190_v52 }
 0x2c3   : > { %v2670_v56 = vpop.f32.mrf.mxu1 }
 0x2c4   : > { %v2407_v58 = vpack.c.bf16 %v1229_v54, %v1228_v53  ;;  %v1227_v59 = vmax.f32 %v1191_v55, 0.0  ;;  %v1212_v62 = vadd.f32 %v2670_v56, %v2231_v18 }
 0x2c5   : > { %v1203_v60 = vpop.f32.mrf.mxu1 }
 0x2c6   : > { %2470 = vst [vmem:[#allocation2 + $0x28] sm:$0xff] %v2407_v58   ;;  %v2402_v61 = vpack.c.bf16 %v1227_v59, %v1226_v57  ;;  %v1204_v0 = vadd.f32 %v2231_v18, %v1203_v60  ;;  %v1232_v3 = vmax.f32 %v1212_v62, 0.0 }
 0x2c7   : > { %v2671_v63 = vpop.f32.mrf.mxu1 }
 0x2c8   : > { %2469 = vst [vmem:[#allocation2 + $0x20] sm:$0xff] %v2402_v61   ;;  %v1215_v1 = vadd.f32 %v2671_v63, %v2231_v18  ;;  %v1230_v6 = vmax.f32 %v1204_v0, 0.0 }
 0x2c9   : > { %v1206_v2 = vpop.f32.mrf.mxu1 }
 0x2ca   : > { %v1233_v4 = vmax.f32 %v1215_v1, 0.0  ;;  %v1207_v5 = vadd.f32 %v2231_v18, %v1206_v2 }
 0x2cc   : > { %v2417_v7 = vpack.c.bf16 %v1233_v4, %v1232_v3  ;;  %v1231_v8 = vmax.f32 %v1207_v5, 0.0  ;;  %1321 = sbr.rel (%p2256_p12) target bundleno = 729 (0x2d9), region = 64 }
 0x2ce   : > { %2472 = vst [vmem:[#allocation2 + $0x38] sm:$0xff] %v2417_v7   ;;  %v2412_v9 = vpack.c.bf16 %v1231_v8, %v1230_v6 }
 0x2d0   : > { %2471 = vst [vmem:[#allocation2 + $0x30] sm:$0xff] %v2412_v9  }
 0x2d1   : > { %1322 = vst [vmem:[%s3304_s6] sm:$0xff] %v1218_v29  ;;  %1323 = vst [vmem:[%s3304_s6 + $0x8] sm:$0xff] %v1219_v31 }
 0x2d2   : > { %1324 = vst [vmem:[%s3304_s6 + $0x10] sm:$0xff] %v1220_v25  ;;  %1325 = vst [vmem:[%s3304_s6 + $0x18] sm:$0xff] %v1221_v26 }
 0x2d3   : > { %1326 = vst [vmem:[%s3304_s6 + $0x20] sm:$0xff] %v1222_v43  ;;  %1327 = vst [vmem:[%s3304_s6 + $0x28] sm:$0xff] %v1223_v45 }
 0x2d4   : > { %1328 = vst [vmem:[%s3304_s6 + $0x30] sm:$0xff] %v1224_v39  ;;  %1329 = vst [vmem:[%s3304_s6 + $0x38] sm:$0xff] %v1225_v40 }
 0x2d5   : > { %1330 = vst [vmem:[%s3304_s6 + $0x40] sm:$0xff] %v1226_v57  ;;  %1331 = vst [vmem:[%s3304_s6 + $0x48] sm:$0xff] %v1227_v59 }
 0x2d6   : > { %1332 = vst [vmem:[%s3304_s6 + $0x50] sm:$0xff] %v1228_v53  ;;  %1333 = vst [vmem:[%s3304_s6 + $0x58] sm:$0xff] %v1229_v54 }
 0x2d7   : > { %1334 = vst [vmem:[%s3304_s6 + $0x60] sm:$0xff] %v1230_v6  ;;  %1335 = vst [vmem:[%s3304_s6 + $0x68] sm:$0xff] %v1231_v8 }
 0x2d8   : > { %1336 = vst [vmem:[%s3304_s6 + $0x70] sm:$0xff] %v1232_v3  ;;  %1337 = vst [vmem:[%s3304_s6 + $0x78] sm:$0xff] %v1233_v4 }
 0x2d9 PF: > { %p2257_p13 = scmp.ne.s32.totalorder %s3314_s8, 0 }
 0x2da   : > { %p2308_p0 = scmp.ne.s32.totalorder (!%p2257_p13), %s2902_s21, 2 }
 0x2db   : > { %1341 = sbr.rel (%p2257_p13) target bundleno = 1415 (0x587), region = 68 }
 0x2e0   : > { %v2856_v10 = vld [vmem:[#allocation2 + $0x38] sm:$0xff]   ;;  %v2857_v11 = vld [vmem:[#allocation2 + $0x30] sm:$0xff]   ;;  %v2858_v12 = vld [vmem:[#allocation2 + $0x28] sm:$0xff]  }
 0x2e1   : > { %2672 = vmatprep.subr.bf16.mxu0 %v2856_v10  ;;  %v2859_v13 = vld [vmem:[#allocation2 + $0x20] sm:$0xff]   ;;  %v2860_v15 = vld [vmem:[#allocation2 + $0x18] sm:$0xff]   ;;  %v2861_v16 = vld [vmem:[#allocation2 + $0x10] sm:$0xff]  }
 0x2e2   : > { %2673 = vmatpush3.bf16.msra.mxu0 %v2856_v10  ;;  %v2864_v14 = vld [vmem:[%s3299_s1] sm:$0xff]   ;;  %v2872_v17 = vld [vmem:[%s2980_s15 + $0x38] sm:$0xff]   ;;  %v2873_v18 = vld [vmem:[%s2980_s15 + $0x30] sm:$0xff]  }
 0x2e3   : > { %2674 = vmatprep.subr.bf16.mxu0 %v2857_v11  ;;  %2688 = vmatprep.mubr.bf16.mxu0 %v2864_v14  ;;  %v2862_v19 = vld [vmem:[#allocation2 + $0x8] sm:$0xff]   ;;  %v2863_v21 = vld [vmem:[#allocation2] sm:$0xff]   ;;  %v2876_v23 = vld [vmem:[%s2980_s15 + $0x18] sm:$0xff]  }
 0x2e4   : > { %2704 = vmatprep.subr.bf16.mxu1 %v2872_v17  ;;  %v2874_v20 = vld [vmem:[%s2980_s15 + $0x28] sm:$0xff]   ;;  %v2875_v22 = vld [vmem:[%s2980_s15 + $0x20] sm:$0xff]   ;;  %v2866_v25 = vld [vmem:[%s3299_s1 + $0x10] sm:$0xff]  }
 0x2e5   : > { %2705 = vmatpush3.bf16.msra.mxu1 %v2872_v17  ;;  %v2865_v24 = vld [vmem:[%s3299_s1 + $0x8] sm:$0xff]   ;;  %v2877_v26 = vld [vmem:[%s2980_s15 + $0x10] sm:$0xff]   ;;  %v2867_v27 = vld [vmem:[%s3299_s1 + $0x18] sm:$0xff]  }
 0x2e6   : > { %2675 = vmatpush3.bf16.msra.mxu0 %v2857_v11  ;;  %2706 = vmatprep.subr.bf16.mxu1 %v2873_v18  ;;  %v2868_v28 = vld [vmem:[%s3299_s1 + $0x20] sm:$0xff]   ;;  %v2869_v29 = vld [vmem:[%s3299_s1 + $0x28] sm:$0xff]   ;;  %v2870_v30 = vld [vmem:[%s3299_s1 + $0x30] sm:$0xff]  }
 0x2e7   : > { %2676 = vmatprep.subr.bf16.mxu0 %v2858_v12  ;;  %v2871_v31 = vld [vmem:[%s3299_s1 + $0x38] sm:$0xff]   ;;  %v2878_v32 = vld [vmem:[%s2980_s15 + $0x8] sm:$0xff]   ;;  %v2879_v33 = vld [vmem:[%s2980_s15] sm:$0xff]  }
 0x2e8   : > { %v2880_v34 = vld [vmem:[%s2985_s18 + $0x38] sm:$0xff]   ;;  %v2881_v35 = vld [vmem:[%s2985_s18 + $0x30] sm:$0xff]   ;;  %v2882_v36 = vld [vmem:[%s2985_s18 + $0x28] sm:$0xff]  }
 0x2e9   : > { %2707 = vmatpush3.bf16.msra.mxu1 %v2873_v18  ;;  %v2883_v37 = vld [vmem:[%s2985_s18 + $0x20] sm:$0xff]   ;;  %v2884_v38 = vld [vmem:[%s2985_s18 + $0x18] sm:$0xff]   ;;  %v2885_v63 = vld [vmem:[%s2985_s18 + $0x10] sm:$0xff]  }
 0x2ea   : > { %2677 = vmatpush3.bf16.msra.mxu0 %v2858_v12  ;;  %2708 = vmatprep.subr.bf16.mxu1 %v2874_v20  ;;  %v2886_v0 = vld [vmem:[%s2985_s18 + $0x8] sm:$0xff]   ;;  %v2887_v1 = vld [vmem:[%s2985_s18] sm:$0xff]  }
 0x2eb   : > { %2678 = vmatprep.subr.bf16.mxu0 %v2859_v13  ;;  %v2274_v4 = vld [vmem:[%s2975_s12] ss:$0 sm:$0xff] }
 0x2ed   : > { %2709 = vmatpush3.bf16.msra.mxu1 %v2874_v20 }
 0x2ee   : > { %2679 = vmatpush3.bf16.msra.mxu0 %v2859_v13  ;;  %2710 = vmatprep.subr.bf16.mxu1 %v2875_v22 }
 0x2ef   : > { %2680 = vmatprep.subr.bf16.mxu0 %v2860_v15 }
 0x2f1   : > { %2711 = vmatpush3.bf16.msra.mxu1 %v2875_v22 }
 0x2f2   : > { %2681 = vmatpush3.bf16.msra.mxu0 %v2860_v15  ;;  %2712 = vmatprep.subr.bf16.mxu1 %v2876_v23 }
 0x2f3   : > { %2682 = vmatprep.subr.bf16.mxu0 %v2861_v16 }
 0x2f5   : > { %2713 = vmatpush3.bf16.msra.mxu1 %v2876_v23 }
 0x2f6   : > { %2683 = vmatpush3.bf16.msra.mxu0 %v2861_v16  ;;  %2714 = vmatprep.subr.bf16.mxu1 %v2877_v26 }
 0x2f7   : > { %2684 = vmatprep.subr.bf16.mxu0 %v2862_v19 }
 0x2f9   : > { %2715 = vmatpush3.bf16.msra.mxu1 %v2877_v26 }
 0x2fa   : > { %2685 = vmatpush3.bf16.msra.mxu0 %v2862_v19  ;;  %2716 = vmatprep.subr.bf16.mxu1 %v2878_v32 }
 0x2fb   : > { %2686 = vmatprep.subr.bf16.mxu0 %v2863_v21 }
 0x2fd   : > { %2717 = vmatpush3.bf16.msra.mxu1 %v2878_v32 }
 0x2fe   : > { %2687 = vmatpush3.bf16.msra.mxu0 %v2863_v21  ;;  %2718 = vmatprep.subr.bf16.mxu1 %v2879_v33 }
 0x2ff   : > { %2736 = vmatprep.subr.bf16.mxu0 %v2880_v34 }
 0x301   : > { %2689 = vmatmul.mubr.bf16.vlgmr.msra.gmra.mxu0 %v2865_v24  ;;  %2719 = vmatpush3.bf16.msra.mxu1 %v2879_v33 }
 0x302   : > { %2692 = vmatprep.mubr.bf16.mxu0 %v2866_v25  ;;  %2784 = vmatprep.subr.bf16.mxu1 %v2880_v34 }
 0x303   : > { %2737 = vmatpush3.bf16.msra.mxu0 %v2880_v34 }
 0x304   : > { %2738 = vmatprep.subr.bf16.mxu0 %v2881_v35 }
 0x307   : > { %2739 = vmatpush3.bf16.msra.mxu0 %v2881_v35 }
 0x308   : > { %2740 = vmatprep.subr.bf16.mxu0 %v2882_v36 }
 0x309   : > { %2693 = vmatmul.mubr.bf16.gmra.mxu0 %v2867_v27 }
 0x30a   : > { %2696 = vmatprep.mubr.bf16.mxu0 %v2868_v28 }
 0x30b   : > { %2741 = vmatpush3.bf16.msra.mxu0 %v2882_v36 }
 0x30c   : > { %2742 = vmatprep.subr.bf16.mxu0 %v2883_v37 }
 0x30f   : > { %2743 = vmatpush3.bf16.msra.mxu0 %v2883_v37 }
 0x310   : > { %2744 = vmatprep.subr.bf16.mxu0 %v2884_v38 }
 0x311   : > { %2697 = vmatmul.mubr.bf16.gmra.mxu0 %v2869_v29 }
 0x312   : > { %2700 = vmatprep.mubr.bf16.mxu0 %v2870_v30 }
 0x313   : > { %2745 = vmatpush3.bf16.msra.mxu0 %v2884_v38 }
 0x314   : > { %2746 = vmatprep.subr.bf16.mxu0 %v2885_v63 }
 0x317   : > { %2747 = vmatpush3.bf16.msra.mxu0 %v2885_v63 }
 0x318   : > { %2748 = vmatprep.subr.bf16.mxu0 %v2886_v0 }
 0x319   : > { %2701 = vmatmul.mubr.bf16.gmra.mxu0 %v2871_v31 }
 0x31b   : > { %2749 = vmatpush3.bf16.msra.mxu0 %v2886_v0 }
 0x31c   : > { %2750 = vmatprep.subr.bf16.mxu0 %v2887_v1 }
 0x31f   : > { %2751 = vmatpush3.bf16.msra.mxu0 %v2887_v1 }
 0x3c1   : > { %v2690_v39 = vpop.f32.mrf.mxu0 }
 0x3c3   : > { %v1504_v40 = vpop.f32.mrf.mxu0 }
 0x3c5   : > { %v2691_v41 = vpop.f32.mrf.mxu0 }
 0x3c6   : > { %v1568_v44 = vpack.c.bf16 %v2691_v41, %v2690_v39 }
 0x3c7   : > { %v1507_v42 = vpop.f32.mrf.mxu0 }
 0x3c8   : > { %v1567_v43 = vpack.c.bf16 %v1507_v42, %v1504_v40 }
 0x3c9   : > { %v2694_v45 = vpop.f32.mrf.mxu0 }
 0x3ca   : > { %2720 = vmatprep.mubr.bf16.mxu1 %v1567_v43 }
 0x3cb   : > { %v1520_v46 = vpop.f32.mrf.mxu0  ;;  %2721 = vmatmul.mubr.bf16.vlgmr.msra.gmra.mxu1 %v1568_v44 }
 0x3cc   : > { %2792 = vmatpush3.bf16.msra.mxu1 %v2880_v34 }
 0x3cd   : > { %v2695_v47 = vpop.f32.mrf.mxu0  ;;  %2785 = vmatprep.subr.bf16.mxu1 %v2881_v35 }
 0x3ce   : > { %v1570_v50 = vpack.c.bf16 %v2695_v47, %v2694_v45 }
 0x3cf   : > { %v1523_v48 = vpop.f32.mrf.mxu0 }
 0x3d0   : > { %v1569_v49 = vpack.c.bf16 %v1523_v48, %v1520_v46  ;;  %2793 = vmatpush3.bf16.msra.mxu1 %v2881_v35 }
 0x3d1   : > { %v2698_v51 = vpop.f32.mrf.mxu0  ;;  %2786 = vmatprep.subr.bf16.mxu1 %v2882_v36 }
 0x3d2   : > { %2724 = vmatprep.mubr.bf16.mxu1 %v1569_v49 }
 0x3d3   : > { %v1536_v52 = vpop.f32.mrf.mxu0  ;;  %2725 = vmatmul.mubr.bf16.gmra.mxu1 %v1570_v50 }
 0x3d4   : > { %2794 = vmatpush3.bf16.msra.mxu1 %v2882_v36 }
 0x3d5   : > { %v2699_v53 = vpop.f32.mrf.mxu0  ;;  %2787 = vmatprep.subr.bf16.mxu1 %v2883_v37 }
 0x3d6   : > { %v1572_v56 = vpack.c.bf16 %v2699_v53, %v2698_v51 }
 0x3d7   : > { %v1539_v54 = vpop.f32.mrf.mxu0 }
 0x3d8   : > { %v1571_v55 = vpack.c.bf16 %v1539_v54, %v1536_v52  ;;  %2795 = vmatpush3.bf16.msra.mxu1 %v2883_v37 }
 0x3d9   : > { %v2702_v57 = vpop.f32.mrf.mxu0  ;;  %2788 = vmatprep.subr.bf16.mxu1 %v2884_v38 }
 0x3da   : > { %2728 = vmatprep.mubr.bf16.mxu1 %v1571_v55 }
 0x3db   : > { %v1552_v58 = vpop.f32.mrf.mxu0  ;;  %2729 = vmatmul.mubr.bf16.gmra.mxu1 %v1572_v56 }
 0x3dc   : > { %2796 = vmatpush3.bf16.msra.mxu1 %v2884_v38 }
 0x3dd   : > { %v2703_v59 = vpop.f32.mrf.mxu0  ;;  %2789 = vmatprep.subr.bf16.mxu1 %v2885_v63 }
 0x3de   : > { %v1574_v62 = vpack.c.bf16 %v2703_v59, %v2702_v57 }
 0x3df   : > { %v1555_v60 = vpop.f32.mrf.mxu0 }
 0x3e0   : > { %v1573_v61 = vpack.c.bf16 %v1555_v60, %v1552_v58  ;;  %2797 = vmatpush3.bf16.msra.mxu1 %v2885_v63  ;;  %v2283_v60 = vld [vmem:[%s2990_s25] ss:$0 sm:$0xff] }
 0x3e1   : > { %2790 = vmatprep.subr.bf16.mxu1 %v2886_v0 }
 0x3e2   : > { %2732 = vmatprep.mubr.bf16.mxu1 %v1573_v61 }
 0x3e3   : > { %2733 = vmatmul.mubr.bf16.gmra.mxu1 %v1574_v62 }
 0x3e4   : > { %2798 = vmatpush3.bf16.msra.mxu1 %v2886_v0 }
 0x3e5   : > { %2791 = vmatprep.subr.bf16.mxu1 %v2887_v1 }
 0x3e8   : > { %2799 = vmatpush3.bf16.msra.mxu1 %v2887_v1 }
 0x48b   : > { %v2722_v2 = vpop.f32.mrf.mxu1 }
 0x48c   : > { %v1689_v8 = vadd.f32 %v2722_v2, %v2274_v4 }
 0x48d   : > { %v1680_v3 = vpop.f32.mrf.mxu1 }
 0x48e   : > { %v1681_v6 = vadd.f32 %v2274_v4, %v1680_v3  ;;  %v1745_v15 = vmax.f32 %v1689_v8, 0.0 }
 0x48f   : > { %v2723_v5 = vpop.f32.mrf.mxu1 }
 0x490   : > { %v1692_v7 = vadd.f32 %v2723_v5, %v2274_v4  ;;  %v1743_v13 = vmax.f32 %v1681_v6, 0.0 }
 0x491   : > { %v1683_v9 = vpop.f32.mrf.mxu1 }
 0x492   : > { %v1684_v10 = vadd.f32 %v2274_v4, %v1683_v9  ;;  %v1746_v11 = vmax.f32 %v1692_v7, 0.0 }
 0x493   : > { %v2726_v12 = vpop.f32.mrf.mxu1 }
 0x494   : > { %v1744_v14 = vmax.f32 %v1684_v10, 0.0  ;;  %v1760_v18 = vpack.c.bf16 %v1746_v11, %v1745_v15  ;;  %v1705_v22 = vadd.f32 %v2726_v12, %v2274_v4 }
 0x495   : > { %v1696_v16 = vpop.f32.mrf.mxu1 }
 0x496   : > { %v1759_v17 = vpack.c.bf16 %v1744_v14, %v1743_v13  ;;  %v1697_v20 = vadd.f32 %v2274_v4, %v1696_v16  ;;  %v1749_v29 = vmax.f32 %v1705_v22, 0.0 }
 0x497   : > { %v2727_v19 = vpop.f32.mrf.mxu1 }
 0x498   : > { %v1708_v21 = vadd.f32 %v2727_v19, %v2274_v4  ;;  %2752 = vmatprep.mubr.bf16.mxu0 %v1759_v17  ;;  %v1747_v27 = vmax.f32 %v1697_v20, 0.0 }
 0x499   : > { %v1699_v23 = vpop.f32.mrf.mxu1  ;;  %2753 = vmatmul.mubr.bf16.vlgmr.msra.gmra.mxu0 %v1760_v18 }
 0x49a   : > { %v1700_v24 = vadd.f32 %v2274_v4, %v1699_v23  ;;  %v1750_v25 = vmax.f32 %v1708_v21, 0.0 }
 0x49b   : > { %v2730_v26 = vpop.f32.mrf.mxu1 }
 0x49c   : > { %v1748_v28 = vmax.f32 %v1700_v24, 0.0  ;;  %v1762_v32 = vpack.c.bf16 %v1750_v25, %v1749_v29  ;;  %v1721_v36 = vadd.f32 %v2730_v26, %v2274_v4 }
 0x49d   : > { %v1712_v30 = vpop.f32.mrf.mxu1 }
 0x49e   : > { %v1761_v31 = vpack.c.bf16 %v1748_v28, %v1747_v27  ;;  %v1713_v34 = vadd.f32 %v2274_v4, %v1712_v30  ;;  %v1753_v43 = vmax.f32 %v1721_v36, 0.0 }
 0x49f   : > { %v2731_v33 = vpop.f32.mrf.mxu1 }
 0x4a0   : > { %v1724_v35 = vadd.f32 %v2731_v33, %v2274_v4  ;;  %2756 = vmatprep.mubr.bf16.mxu0 %v1761_v31  ;;  %v1751_v41 = vmax.f32 %v1713_v34, 0.0 }
 0x4a1   : > { %v1715_v37 = vpop.f32.mrf.mxu1  ;;  %2757 = vmatmul.mubr.bf16.gmra.mxu0 %v1762_v32 }
 0x4a2   : > { %v1716_v38 = vadd.f32 %v2274_v4, %v1715_v37  ;;  %v1754_v39 = vmax.f32 %v1724_v35, 0.0 }
 0x4a3   : > { %v2734_v40 = vpop.f32.mrf.mxu1 }
 0x4a4   : > { %v1752_v42 = vmax.f32 %v1716_v38, 0.0  ;;  %v1764_v46 = vpack.c.bf16 %v1754_v39, %v1753_v43  ;;  %v1737_v50 = vadd.f32 %v2734_v40, %v2274_v4 }
 0x4a5   : > { %v1728_v44 = vpop.f32.mrf.mxu1 }
 0x4a6   : > { %v1763_v45 = vpack.c.bf16 %v1752_v42, %v1751_v41  ;;  %v1729_v48 = vadd.f32 %v2274_v4, %v1728_v44  ;;  %v1757_v56 = vmax.f32 %v1737_v50, 0.0 }
 0x4a7   : > { %v2735_v47 = vpop.f32.mrf.mxu1 }
 0x4a8   : > { %v1740_v49 = vadd.f32 %v2735_v47, %v2274_v4  ;;  %2760 = vmatprep.mubr.bf16.mxu1 %v1763_v45  ;;  %v1755_v54 = vmax.f32 %v1729_v48, 0.0 }
 0x4a9   : > { %v1731_v51 = vpop.f32.mrf.mxu1  ;;  %2761 = vmatmul.mubr.bf16.vlgmr.msra.gmra.mxu1 %v1764_v46 }
 0x4aa   : > { %v1732_v52 = vadd.f32 %v2274_v4, %v1731_v51  ;;  %v1758_v53 = vmax.f32 %v1740_v49, 0.0 }
 0x4ac   : > { %v1756_v55 = vmax.f32 %v1732_v52, 0.0  ;;  %v1766_v58 = vpack.c.bf16 %v1758_v53, %v1757_v56 }
 0x4ae   : > { %v1765_v57 = vpack.c.bf16 %v1756_v55, %v1755_v54 }
 0x4b0   : > { %2764 = vmatprep.mubr.bf16.mxu1 %v1765_v57 }
 0x4b1   : > { %2765 = vmatmul.mubr.bf16.gmra.mxu1 %v1766_v58 }
 0x559   : > { %v2754_v59 = vpop.f32.mrf.mxu0 }
 0x55a   : > { %v3234_v62 = vadd.f32 %v2754_v59, %v2283_v60 }
 0x55b   : > { %v1872_v61 = vpop.f32.mrf.mxu0 }
 0x55c   : > { %v1873_v0 = vadd.f32 %v2283_v60, %v1872_v61  ;;  %v1937_v3 = vmax.f32 %v3234_v62, 0.0 }
 0x55d   : > { %v2755_v63 = vpop.f32.mrf.mxu0 }
 0x55e   : > { %v3236_v1 = vadd.f32 %v2755_v63, %v2283_v60  ;;  %v1935_v7 = vmax.f32 %v1873_v0, 0.0 }
 0x55f   : > { %v1875_v2 = vpop.f32.mrf.mxu0 }
 0x560   : > { %v1938_v4 = vmax.f32 %v3236_v1, 0.0  ;;  %v1876_v5 = vadd.f32 %v2283_v60, %v1875_v2 }
 0x561   : > { %v2758_v6 = vpop.f32.mrf.mxu0 }
 0x562   : > { %v2427_v8 = vpack.c.bf16 %v1938_v4, %v1937_v3  ;;  %v1936_v9 = vmax.f32 %v1876_v5, 0.0  ;;  %v1897_v12 = vadd.f32 %v2758_v6, %v2283_v60 }
 0x563   : > { %v1888_v10 = vpop.f32.mrf.mxu0 }
 0x564   : > { %2473 = vst [vmem:[#allocation3 + $0x8] sm:$0xff] %v2427_v8   ;;  %v2422_v11 = vpack.c.bf16 %v1936_v9, %v1935_v7  ;;  %v1889_v14 = vadd.f32 %v2283_v60, %v1888_v10  ;;  %v1941_v17 = vmax.f32 %v1897_v12, 0.0 }
 0x565   : > { %v2759_v13 = vpop.f32.mrf.mxu0 }
 0x566   : > { %2423 = vst [vmem:[#allocation3] sm:$0xff] %v2422_v11   ;;  %v1900_v15 = vadd.f32 %v2759_v13, %v2283_v60  ;;  %v1939_v21 = vmax.f32 %v1889_v14, 0.0 }
 0x567   : > { %v1891_v16 = vpop.f32.mrf.mxu0 }
 0x568   : > { %v1942_v18 = vmax.f32 %v1900_v15, 0.0  ;;  %v1892_v19 = vadd.f32 %v2283_v60, %v1891_v16 }
 0x569   : > { %v2762_v20 = vpop.f32.mrf.mxu1 }
 0x56a   : > { %v2437_v22 = vpack.c.bf16 %v1942_v18, %v1941_v17  ;;  %v1940_v23 = vmax.f32 %v1892_v19, 0.0  ;;  %v1913_v26 = vadd.f32 %v2762_v20, %v2283_v60 }
 0x56b   : > { %v1904_v24 = vpop.f32.mrf.mxu1 }
 0x56c   : > { %2475 = vst [vmem:[#allocation3 + $0x18] sm:$0xff] %v2437_v22   ;;  %v2432_v25 = vpack.c.bf16 %v1940_v23, %v1939_v21  ;;  %v1905_v28 = vadd.f32 %v2283_v60, %v1904_v24  ;;  %v1945_v31 = vmax.f32 %v1913_v26, 0.0 }
 0x56d   : > { %v2763_v27 = vpop.f32.mrf.mxu1 }
 0x56e   : > { %2474 = vst [vmem:[#allocation3 + $0x10] sm:$0xff] %v2432_v25   ;;  %v1916_v29 = vadd.f32 %v2763_v27, %v2283_v60  ;;  %v1943_v35 = vmax.f32 %v1905_v28, 0.0 }
 0x56f   : > { %v1907_v30 = vpop.f32.mrf.mxu1 }
 0x570   : > { %v1946_v32 = vmax.f32 %v1916_v29, 0.0  ;;  %v1908_v33 = vadd.f32 %v2283_v60, %v1907_v30 }
 0x571   : > { %v2766_v34 = vpop.f32.mrf.mxu1 }
 0x572   : > { %v2447_v36 = vpack.c.bf16 %v1946_v32, %v1945_v31  ;;  %v1944_v37 = vmax.f32 %v1908_v33, 0.0  ;;  %v1929_v40 = vadd.f32 %v2766_v34, %v2283_v60 }
 0x573   : > { %v1920_v38 = vpop.f32.mrf.mxu1 }
 0x574   : > { %2477 = vst [vmem:[#allocation3 + $0x28] sm:$0xff] %v2447_v36   ;;  %v2442_v39 = vpack.c.bf16 %v1944_v37, %v1943_v35  ;;  %v1921_v42 = vadd.f32 %v2283_v60, %v1920_v38  ;;  %v1949_v45 = vmax.f32 %v1929_v40, 0.0 }
 0x575   : > { %v2767_v41 = vpop.f32.mrf.mxu1 }
 0x576   : > { %2476 = vst [vmem:[#allocation3 + $0x20] sm:$0xff] %v2442_v39   ;;  %v1932_v43 = vadd.f32 %v2767_v41, %v2283_v60  ;;  %v1947_v48 = vmax.f32 %v1921_v42, 0.0 }
 0x577   : > { %v1923_v44 = vpop.f32.mrf.mxu1 }
 0x578   : > { %v1950_v46 = vmax.f32 %v1932_v43, 0.0  ;;  %v1924_v47 = vadd.f32 %v2283_v60, %v1923_v44 }
 0x57a   : > { %v2457_v49 = vpack.c.bf16 %v1950_v46, %v1949_v45  ;;  %v1948_v50 = vmax.f32 %v1924_v47, 0.0  ;;  %2038 = sbr.rel (%p2308_p0) target bundleno = 1415 (0x587), region = 72 }
 0x57c   : > { %2479 = vst [vmem:[#allocation3 + $0x38] sm:$0xff] %v2457_v49   ;;  %v2452_v51 = vpack.c.bf16 %v1948_v50, %v1947_v48 }
 0x57e   : > { %2478 = vst [vmem:[#allocation3 + $0x30] sm:$0xff] %v2452_v51  }
 0x57f   : > { %2039 = vst [vmem:[%s3304_s6] sm:$0xff] %v1935_v7  ;;  %2040 = vst [vmem:[%s3304_s6 + $0x8] sm:$0xff] %v1936_v9 }
 0x580   : > { %2041 = vst [vmem:[%s3304_s6 + $0x10] sm:$0xff] %v1937_v3  ;;  %2042 = vst [vmem:[%s3304_s6 + $0x18] sm:$0xff] %v1938_v4 }
 0x581   : > { %2043 = vst [vmem:[%s3304_s6 + $0x20] sm:$0xff] %v1939_v21  ;;  %2044 = vst [vmem:[%s3304_s6 + $0x28] sm:$0xff] %v1940_v23 }
 0x582   : > { %2045 = vst [vmem:[%s3304_s6 + $0x30] sm:$0xff] %v1941_v17  ;;  %2046 = vst [vmem:[%s3304_s6 + $0x38] sm:$0xff] %v1942_v18 }
 0x583   : > { %2047 = vst [vmem:[%s3304_s6 + $0x40] sm:$0xff] %v1943_v35  ;;  %2048 = vst [vmem:[%s3304_s6 + $0x48] sm:$0xff] %v1944_v37 }
 0x584   : > { %2049 = vst [vmem:[%s3304_s6 + $0x50] sm:$0xff] %v1945_v31  ;;  %2050 = vst [vmem:[%s3304_s6 + $0x58] sm:$0xff] %v1946_v32 }
 0x585   : > { %2051 = vst [vmem:[%s3304_s6 + $0x60] sm:$0xff] %v1947_v48  ;;  %2052 = vst [vmem:[%s3304_s6 + $0x68] sm:$0xff] %v1948_v50 }
 0x586   : > { %2053 = vst [vmem:[%s3304_s6 + $0x70] sm:$0xff] %v1949_v45  ;;  %2054 = vst [vmem:[%s3304_s6 + $0x78] sm:$0xff] %v1950_v46 }
 0x587 PF: > { %s16_s23 = sadd.s32 1, %s2910_s23   ;;  %s3305_s21 = smov %s2906_s22 }
 0x588   : > { %p13_p1 = scmp.ge.s32.totalorder %s16_s23, 5   ;;  %s3306_s22 = smov %s3308_s24 }
 0x58a   :  { %15 = sbr.rel (!%p13_p1) target bundleno = 2 (0x2), region = 120 }

</bundles_post_ra>
